<compile_context>
chip_gen: v5e
topology: v5e:2x2
jax: 0.10.0
libtpu: 0.0.40
codegen_flags: <defaults>
</compile_context>

<pallas_src>
import functools

import jax
import jax.numpy as jnp
from jax.experimental import pallas as pl
from jax.experimental.pallas import tpu as pltpu

LANE = 128   # vreg lane width
SUB = 8      # sublane tile


# ---------------------------------------------------------------------------
# Per-generation tuning
# ---------------------------------------------------------------------------
def _device_kind():
    try:
        return jax.devices()[0].device_kind.lower()
    except Exception:  # pragma: no cover
        return ""


def _gen_params():
    """(rows-per-step target, vmem_limit_bytes) per TPU generation."""
    kind = _device_kind()
    if "v7" in kind:
        # 64 MiB physical VMEM; 2 inputs x 2 bufs x 4 MiB = 16 MiB + temps.
        return 8192, 48 * 1024 * 1024
    if "v6" in kind or "v5" in kind:
        # 128 MiB physical VMEM; 2 inputs x 2 bufs x 2 MiB = 8 MiB + temps.
        return 4096, 96 * 1024 * 1024
    return 2048, 32 * 1024 * 1024


def _auto_core_splits():
    # TODO(synk): replace string sniffing with a proper per-chip core count
    #             query when available; 2 TCs/chip only on v7x.
    return 2 if "v7" in _device_kind() else 1


def _choose_tm(rows, target):
    if rows >= target:
        return target
    # Single (possibly over-covering) block; multiple of 32 keeps the block
    # sublane-tile legal for any input dtype and divisible by 8 for reshape.
    return ((rows + 31) // 32) * 32


# ---------------------------------------------------------------------------
# Pass 1 kernel: (8,128) lane-parallel partials of sum(|x-y|) and sum((x-y)^2)
# ---------------------------------------------------------------------------
def _make_sums_kernel(tm, rows, spc):
    nblk = tm // SUB

    def kernel(x_ref, y_ref, abs_ref, sq_ref):
        c = pl.program_id(0)
        i = pl.program_id(1)

        @pl.when(i == 0)
        def _():
            abs_ref[...] = jnp.zeros_like(abs_ref)
            sq_ref[...] = jnp.zeros_like(sq_ref)

        d = x_ref[...].astype(jnp.float32) - y_ref[...].astype(jnp.float32)
        g = c * spc + i            # global block index (may exceed last block)
        rem = rows - g * tm        # valid rows in this block

        def accum(dm):
            # Reduce (tm,128) -> (8,128) with within-lane vreg adds (no XLU).
            abs_ref[...] += jnp.abs(dm).reshape(nblk, SUB, LANE).sum(axis=0)[None]
            sq_ref[...] += (dm * dm).reshape(nblk, SUB, LANE).sum(axis=0)[None]

        @pl.when(rem >= tm)        # hot path: full block, no masking
        def _():
            accum(d)

        @pl.when(rem < tm)         # ragged last block / clamped dup block
        def _():
            ridx = jax.lax.broadcasted_iota(jnp.int32, (tm, LANE), 0)
            accum(jnp.where(ridx < rem, d, 0.0))

    return kernel


# ---------------------------------------------------------------------------
# Pass 2 kernel: threshold-masked partial sums and counts.
# thr_ref (SMEM scalar prefetch) holds [mae_threshold, mse_threshold].
# ---------------------------------------------------------------------------
def _make_masked_kernel(tm, rows, spc, compute_mae, compute_mse):
    nblk = tm // SUB

    def kernel(thr_ref, x_ref, y_ref, *out_refs):
        c = pl.program_id(0)
        i = pl.program_id(1)

        @pl.when(i == 0)
        def _():
            for r in out_refs:
                r[...] = jnp.zeros_like(r)

        x = x_ref[...].astype(jnp.float32)
        y = y_ref[...].astype(jnp.float32)
        d = jnp.abs(x - y)
        g = c * spc + i
        rem = rows - g * tm

        def reduce8(v):
            return v.reshape(nblk, SUB, LANE).sum(axis=0)[None]

        def accum(valid):
            refs = list(out_refs)
            if compute_mae:
                s_ref, c_ref = refs[0], refs[1]
                refs = refs[2:]
                sel = d >= thr_ref[0]
                if valid is not None:
                    sel = jnp.logical_and(sel, valid)
                s_ref[...] += reduce8(jnp.where(sel, d, 0.0))
                c_ref[...] += reduce8(sel.astype(jnp.float32))
            if compute_mse:
                s_ref, c_ref = refs[0], refs[1]
                d2 = d * d
                sel = d2 >= thr_ref[1]
                if valid is not None:
                    sel = jnp.logical_and(sel, valid)
                s_ref[...] += reduce8(jnp.where(sel, d2, 0.0))
                c_ref[...] += reduce8(sel.astype(jnp.float32))

        @pl.when(rem >= tm)
        def _():
            accum(None)

        @pl.when(rem < tm)
        def _():
            ridx = jax.lax.broadcasted_iota(jnp.int32, (tm, LANE), 0)
            accum(ridx < rem)

    return kernel


# ---------------------------------------------------------------------------
# pallas_call wrappers
# ---------------------------------------------------------------------------
def _global_sums(x2, y2, tm, splits, vmem_limit):
    rows = x2.shape[0]
    nb = pl.cdiv(rows, tm)           # real number of row blocks
    spc = pl.cdiv(nb, splits)        # blocks per core split

    in_spec = pl.BlockSpec(
        (tm, LANE), lambda c, i: (jnp.minimum(c * spc + i, nb - 1), 0))
    out_spec = pl.BlockSpec((1, SUB, LANE), lambda c, i: (c, 0, 0))

    return pl.pallas_call(
        _make_sums_kernel(tm, rows, spc),
        out_shape=(jax.ShapeDtypeStruct((splits, SUB, LANE), jnp.float32),
                   jax.ShapeDtypeStruct((splits, SUB, LANE), jnp.float32)),
        grid_spec=pltpu.PrefetchScalarGridSpec(
            num_scalar_prefetch=0,
            grid=(splits, spc),
            in_specs=[in_spec, in_spec],
            out_specs=(out_spec, out_spec)),
        compiler_params=pltpu.CompilerParams(
            dimension_semantics=("parallel", "arbitrary"),
            vmem_limit_bytes=vmem_limit),
    )(x2, y2)


def _masked_sums(thr, x2, y2, tm, splits, vmem_limit, compute_mae, compute_mse):
    rows = x2.shape[0]
    nb = pl.cdiv(rows, tm)
    spc = pl.cdiv(nb, splits)
    n_out = 2 * (int(compute_mae) + int(compute_mse))

    in_spec = pl.BlockSpec(
        (tm, LANE), lambda c, i, thr_ref: (jnp.minimum(c * spc + i, nb - 1), 0))
    out_spec = pl.BlockSpec((1, SUB, LANE), lambda c, i, thr_ref: (c, 0, 0))

    return pl.pallas_call(
        _make_masked_kernel(tm, rows, spc, compute_mae, compute_mse),
        out_shape=tuple(jax.ShapeDtypeStruct((splits, SUB, LANE), jnp.float32)
                        for _ in range(n_out)),
        grid_spec=pltpu.PrefetchScalarGridSpec(
            num_scalar_prefetch=1,
            grid=(splits, spc),
            in_specs=[in_spec, in_spec],
            out_specs=(out_spec,) * n_out),
        compiler_params=pltpu.CompilerParams(
            dimension_semantics=("parallel", "arbitrary"),
            vmem_limit_bytes=vmem_limit),
    )(thr, x2, y2)


# ---------------------------------------------------------------------------
# Pure-JAX forward (fast path for small inputs + correctness reference)
# ---------------------------------------------------------------------------
def _jax_forward(x, y, *, use_mse_threshold, use_mae_threshold, mse_threshold,
                 mae_threshold, l1_weight, l2_weight, threshold_weight,
                 non_threshold_weight, mse_clip_ratio, mae_clip_ratio):
    xf = x.reshape(-1).astype(jnp.float32)
    yf = y.reshape(-1).astype(jnp.float32)
    d = jnp.abs(xf - yf)
    d2 = (xf - yf) ** 2
    general_mean = jnp.mean(d)
    mae_loss = general_mean
    mse_loss = jnp.mean(d2)
    mae_t, mse_t = mae_loss, mse_loss

    if use_mse_threshold:
        thr = mse_loss if mse_threshold is None else jnp.asarray(
            mse_threshold, jnp.float32)
        sel = d2 >= thr
        cnt = jnp.sum(sel.astype(jnp.float32))
        v = jnp.where(cnt > 0,
                      jnp.sum(jnp.where(sel, d2, 0.0)) / jnp.maximum(cnt, 1.0),
                      0.0)
        if mse_clip_ratio is not None:
            clip = mse_clip_ratio * general_mean
            v = jnp.where(jnp.logical_and(cnt > 0, v > clip), clip, v)
        mse_t = v

    if use_mae_threshold:
        thr = mae_loss if mae_threshold is None else jnp.asarray(
            mae_threshold, jnp.float32)
        sel = d >= thr
        cnt = jnp.sum(sel.astype(jnp.float32))
        v = jnp.where(cnt > 0,
                      jnp.sum(jnp.where(sel, d, 0.0)) / jnp.maximum(cnt, 1.0),
                      0.0)
        if mae_clip_ratio is not None:
            clip = mae_clip_ratio * general_mean
            v = jnp.where(jnp.logical_and(cnt > 0, v > clip), clip, v)
        mae_t = v

    combined_t = l1_weight * mae_t + l2_weight * mse_t
    combined_nt = l1_weight * mae_loss + l2_weight * mse_loss
    return threshold_weight * combined_t + non_threshold_weight * combined_nt


_DEFAULT_CFG = dict(use_mse_threshold=False, use_mae_threshold=True,
                    mse_threshold=None, mae_threshold=None,
                    l1_weight=1.0, l2_weight=1.0, threshold_weight=1.0,
                    non_threshold_weight=1.0, mse_clip_ratio=None,
                    mae_clip_ratio=100.0)


# ---------------------------------------------------------------------------
# Full forward (matches FlexibleThresholdedLoss.forward semantics)
# ---------------------------------------------------------------------------
@functools.partial(
    jax.jit,
    static_argnames=("use_mse_threshold", "use_mae_threshold", "mse_threshold",
                     "mae_threshold", "reduction", "l1_weight", "l2_weight",
                     "threshold_weight", "non_threshold_weight",
                     "mse_clip_ratio", "mae_clip_ratio",
                     "min_pallas_elements", "core_splits", "block_rows"))
def flexible_thresholded_loss(
        input_img, target_img, *,
        use_mse_threshold=False, use_mae_threshold=True,
        mse_threshold=None, mae_threshold=None,
        reduction="mean", l1_weight=1.0, l2_weight=1.0,
        threshold_weight=1.0, non_threshold_weight=1.0,
        mse_clip_ratio=None, mae_clip_ratio=100.0,
        min_pallas_elements=262144, core_splits=None, block_rows=None):

    # 'mean'/'sum' reductions are no-ops on the scalar losses (as in the
    # reference module, which only ever produces 0-d losses).
    del reduction

    x = input_img.reshape(-1)
    y = target_img.reshape(-1)
    n = x.shape[0]

    cfg = dict(use_mse_threshold=use_mse_threshold,
               use_mae_threshold=use_mae_threshold,
               mse_threshold=mse_threshold, mae_threshold=mae_threshold,
               l1_weight=l1_weight, l2_weight=l2_weight,
               threshold_weight=threshold_weight,
               non_threshold_weight=non_threshold_weight,
               mse_clip_ratio=mse_clip_ratio, mae_clip_ratio=mae_clip_ratio)

    # Small inputs: fused XLA elementwise+reduce beats two kernel launches.
    if n < max(min_pallas_elements, 2 * LANE):
        return _jax_forward(x, y, **cfg)

    # ---- lane-dense layout prep (no full-array pad) ------------------------
    rows = n // LANE
    n_main = rows * LANE
    if n_main != n:
        # TODO(synk): the aligned-prefix slice may still materialize a copy in
        #             XLA for misaligned n; keep flatten sizes 128-divisible at
        #             the caller to avoid it entirely.
        x_main = jax.lax.slice(x, (0,), (n_main,))
        y_main = jax.lax.slice(y, (0,), (n_main,))
        tail_d = (jax.lax.slice(x, (n_main,), (n,)).astype(jnp.float32)
                  - jax.lax.slice(y, (n_main,), (n,)).astype(jnp.float32))
        tail_abs_d = jnp.abs(tail_d)
        tail_sq_d = tail_d * tail_d
        tail_abs = jnp.sum(tail_abs_d)
        tail_sq = jnp.sum(tail_sq_d)
    else:
        x_main, y_main = x, y
        tail_abs_d = None
        tail_sq_d = None
        tail_abs = jnp.float32(0.0)
        tail_sq = jnp.float32(0.0)

    x2 = x_main.reshape(rows, LANE)
    y2 = y_main.reshape(rows, LANE)

    tm_target, vmem_limit = _gen_params()
    tm = int(block_rows) if block_rows is not None else _choose_tm(rows, tm_target)
    nb = pl.cdiv(rows, tm)
    splits = int(core_splits) if core_splits is not None else _auto_core_splits()
    splits = max(1, min(splits, nb))

    # ---- pass 1: global sums ------------------------------------------------
    abs_part, sq_part = _global_sums(x2, y2, tm, splits, vmem_limit)
    sabs = jnp.sum(abs_part) + tail_abs
    ssq = jnp.sum(sq_part) + tail_sq

    general_mean = sabs / n          # mean(|x - y|)
    mae_loss = general_mean
    mse_loss = ssq / n               # mean((x - y)^2)

    mae_thresholded_loss = mae_loss
    mse_thresholded_loss = mse_loss

    # ---- pass 2: threshold-masked sums (only if some threshold is on) ------
    if use_mae_threshold or use_mse_threshold:
        # adaptive thresholds (first-call semantics of the PyTorch module)
        mae_thr = mae_loss if mae_threshold is None else jnp.asarray(
            mae_threshold, jnp.float32)
        mse_thr = mse_loss if mse_threshold is None else jnp.asarray(
            mse_threshold, jnp.float32)
        thr = jnp.stack([jnp.asarray(mae_thr, jnp.float32),
                         jnp.asarray(mse_thr, jnp.float32)])

        outs = list(_masked_sums(thr, x2, y2, tm, splits, vmem_limit,
                                 use_mae_threshold, use_mse_threshold))

        if use_mae_threshold:
            mae_sum = jnp.sum(outs[0])
            mae_cnt = jnp.sum(outs[1])
            outs = outs[2:]
            if tail_abs_d is not None:
                sel = tail_abs_d >= mae_thr
                mae_sum = mae_sum + jnp.sum(jnp.where(sel, tail_abs_d, 0.0))
                mae_cnt = mae_cnt + jnp.sum(sel.astype(jnp.float32))
            mae_t = jnp.where(mae_cnt > 0,
                              mae_sum / jnp.maximum(mae_cnt, 1.0), 0.0)
            if mae_clip_ratio is not None:
                clip = mae_clip_ratio * general_mean
                mae_t = jnp.where(jnp.logical_and(mae_cnt > 0, mae_t > clip),
                                  clip, mae_t)
            mae_thresholded_loss = mae_t

        if use_mse_threshold:
            mse_sum = jnp.sum(outs[0])
            mse_cnt = jnp.sum(outs[1])
            if tail_sq_d is not None:
                sel = tail_sq_d >= mse_thr
                mse_sum = mse_sum + jnp.sum(jnp.where(sel, tail_sq_d, 0.0))
                mse_cnt = mse_cnt + jnp.sum(sel.astype(jnp.float32))
            mse_t = jnp.where(mse_cnt > 0,
                              mse_sum / jnp.maximum(mse_cnt, 1.0), 0.0)
            if mse_clip_ratio is not None:
                clip = mse_clip_ratio * general_mean
                mse_t = jnp.where(jnp.logical_and(mse_cnt > 0, mse_t > clip),
                                  clip, mse_t)
            mse_thresholded_loss = mse_t

    combined_thresholded = (l1_weight * mae_thresholded_loss
                            + l2_weight * mse_thresholded_loss)
    combined_non_thresholded = l1_weight * mae_loss + l2_weight * mse_loss
    return (threshold_weight * combined_thresholded
            + non_threshold_weight * combined_non_thresholded)


if __name__ == "__main__":
    key = jax.random.PRNGKey(0)
    k1, k2, k3, k4, k5, k6 = jax.random.split(key, 6)

    # 1) Demo shape (batch=2, channels=4, 16x16), forcing the Pallas path.
    a = jax.random.normal(k1, (2, 4, 16, 16), dtype=jnp.float32)
    b = jax.random.normal(k2, (2, 4, 16, 16), dtype=jnp.float32)
    out = jax.block_until_ready(
        flexible_thresholded_loss(a, b, min_pallas_elements=0))
    ref = _jax_forward(a, b, **_DEFAULT_CFG)
    assert jnp.allclose(out, ref, rtol=5e-4, atol=1e-5), (out, ref)

    # 2) Misaligned element count (n % 128 != 0): exercises the external tail
    #    path and the ragged-last-block row mask.
    a = jax.random.normal(k3, (3, 5, 17, 13), dtype=jnp.float32)
    b = jax.random.normal(k4, (3, 5, 17, 13), dtype=jnp.float32)
    out = jax.block_until_ready(
        flexible_thresholded_loss(a, b, min_pallas_elements=0))
    ref = _jax_forward(a, b, **_DEFAULT_CFG)
    assert jnp.allclose(out, ref, rtol=5e-4, atol=1e-5), (out, ref)

    # 3) Multi-block grid with a forced 2-way core split (the v7x path; runs
    #    as a sequential parallel axis on 1-TC chips) and bf16 inputs.
    a = jax.random.normal(k5, (2, 4, 128, 128), dtype=jnp.float32).astype(jnp.bfloat16)
    b = jax.random.normal(k6, (2, 4, 128, 128), dtype=jnp.float32).astype(jnp.bfloat16)
    out = jax.block_until_ready(
        flexible_thresholded_loss(a, b, min_pallas_elements=0,
                                  core_splits=2, block_rows=160))
    ref = _jax_forward(a, b, **_DEFAULT_CFG)
    assert jnp.allclose(out, ref, rtol=5e-3, atol=1e-4), (out, ref)

    # 4) Default thresholds at the demo shape take the pure-JAX fast path.
    out = jax.block_until_ready(flexible_thresholded_loss(
        jax.random.normal(k1, (2, 4, 16, 16), dtype=jnp.float32),
        jax.random.normal(k2, (2, 4, 16, 16), dtype=jnp.float32)))

    print("KERNEL_OK")
</pallas_src>

<mosaic_0001>
module attributes {stable_mosaic.version = 11 : i64} {
  func.func @kernel(%arg0: i32, %arg1: i32, %arg2: memref<32x128xf32, #tpu.memory_space<vmem>>, %arg3: memref<32x128xf32, #tpu.memory_space<vmem>>, %arg4: memref<1x8x128xf32, #tpu.memory_space<vmem>>, %arg5: memref<1x8x128xf32, #tpu.memory_space<vmem>>) attributes {dimension_semantics = [#tpu.dimension_semantics<parallel>, #tpu.dimension_semantics<arbitrary>], iteration_bounds = array<i64: 1, 1>, scalar_prefetch = 0 : i64, scratch_operands = 0 : i64, tpu.core_type = #tpu.core_type<tc>, window_params = [{transform_indices = @transform_0, window_bounds = array<i64: 32, 128>}, {transform_indices = @transform_1, window_bounds = array<i64: 32, 128>}, {transform_indices = @transform_2, window_bounds = array<i64: 1, 8, 128>}, {transform_indices = @transform_3, window_bounds = array<i64: 1, 8, 128>}]} {
    %c0_i32 = arith.constant 0 : i32
    %0 = arith.cmpi eq, %arg1, %c0_i32 : i32
    %1 = arith.extui %0 : i1 to i32
    %c0_i32_0 = arith.constant 0 : i32
    %2 = arith.cmpi ne, %1, %c0_i32_0 : i32
    scf.if %2 {
      %cst = arith.constant 0.000000e+00 : f32
      %16 = vector.broadcast %cst : f32 to vector<1x8x128xf32>
      %c0_8 = arith.constant 0 : index
      %c0_9 = arith.constant 0 : index
      %c0_10 = arith.constant 0 : index
      %17 = vector.load %arg4[%c0_8, %c0_9, %c0_10] : memref<1x8x128xf32, #tpu.memory_space<vmem>>, vector<1x8x128xf32>
      tpu.vector_store %arg4[%c0_8, %c0_9, %c0_10], %16 {strides = array<i32>} : memref<1x8x128xf32, #tpu.memory_space<vmem>>, vector<1x8x128xf32>,
      %cst_11 = arith.constant 0.000000e+00 : f32
      %18 = vector.broadcast %cst_11 : f32 to vector<1x8x128xf32>
      %c0_12 = arith.constant 0 : index
      %c0_13 = arith.constant 0 : index
      %c0_14 = arith.constant 0 : index
      %19 = vector.load %arg5[%c0_12, %c0_13, %c0_14] : memref<1x8x128xf32, #tpu.memory_space<vmem>>, vector<1x8x128xf32>
      tpu.vector_store %arg5[%c0_12, %c0_13, %c0_14], %18 {strides = array<i32>} : memref<1x8x128xf32, #tpu.memory_space<vmem>>, vector<1x8x128xf32>,
    } else {
    }
    %c0 = arith.constant 0 : index
    %c0_1 = arith.constant 0 : index
    %3 = vector.load %arg2[%c0, %c0_1] : memref<32x128xf32, #tpu.memory_space<vmem>>, vector<32x128xf32>
    %c0_2 = arith.constant 0 : index
    %c0_3 = arith.constant 0 : index
    %4 = vector.load %arg3[%c0_2, %c0_3] : memref<32x128xf32, #tpu.memory_space<vmem>>, vector<32x128xf32>
    %5 = arith.subf %3, %4 : vector<32x128xf32>
    %c1_i32 = arith.constant 1 : i32
    %6 = arith.muli %arg0, %c1_i32 : i32
    %7 = arith.addi %6, %arg1 : i32
    %c32_i32 = arith.constant 32 : i32
    %8 = arith.muli %7, %c32_i32 : i32
    %c16_i32 = arith.constant 16 : i32
    %9 = arith.subi %c16_i32, %8 : i32
    %c32_i32_4 = arith.constant 32 : i32
    %10 = arith.cmpi sge, %9, %c32_i32_4 : i32
    %11 = arith.extui %10 : i1 to i32
    %c0_i32_5 = arith.constant 0 : i32
    %12 = arith.cmpi ne, %11, %c0_i32_5 : i32
    scf.if %12 {
      %c0_8 = arith.constant 0 : index
      %c0_9 = arith.constant 0 : index
      %c0_10 = arith.constant 0 : index
      %16 = vector.load %arg4[%c0_8, %c0_9, %c0_10] : memref<1x8x128xf32, #tpu.memory_space<vmem>>, vector<1x8x128xf32>
      %17 = math.absf %5 : vector<32x128xf32>
      %18 = vector.shape_cast %17 : vector<32x128xf32> to vector<4x8x128xf32>
      %cst = arith.constant dense<0.000000e+00> : vector<8x128xf32>
      %19 = vector.multi_reduction <add>, %18, %cst [0] : vector<4x8x128xf32> to vector<8x128xf32>
      %20 = vector.shape_cast %19 : vector<8x128xf32> to vector<1x8x128xf32>
      %21 = arith.addf %16, %20 : vector<1x8x128xf32>
      %c0_11 = arith.constant 0 : index
      %c0_12 = arith.constant 0 : index
      %c0_13 = arith.constant 0 : index
      %22 = vector.load %arg4[%c0_11, %c0_12, %c0_13] : memref<1x8x128xf32, #tpu.memory_space<vmem>>, vector<1x8x128xf32>
      tpu.vector_store %arg4[%c0_11, %c0_12, %c0_13], %21 {strides = array<i32>} : memref<1x8x128xf32, #tpu.memory_space<vmem>>, vector<1x8x128xf32>,
      %c0_14 = arith.constant 0 : index
      %c0_15 = arith.constant 0 : index
      %c0_16 = arith.constant 0 : index
      %23 = vector.load %arg5[%c0_14, %c0_15, %c0_16] : memref<1x8x128xf32, #tpu.memory_space<vmem>>, vector<1x8x128xf32>
      %24 = arith.mulf %5, %5 : vector<32x128xf32>
      %25 = vector.shape_cast %24 : vector<32x128xf32> to vector<4x8x128xf32>
      %cst_17 = arith.constant dense<0.000000e+00> : vector<8x128xf32>
      %26 = vector.multi_reduction <add>, %25, %cst_17 [0] : vector<4x8x128xf32> to vector<8x128xf32>
      %27 = vector.shape_cast %26 : vector<8x128xf32> to vector<1x8x128xf32>
      %28 = arith.addf %23, %27 : vector<1x8x128xf32>
      %c0_18 = arith.constant 0 : index
      %c0_19 = arith.constant 0 : index
      %c0_20 = arith.constant 0 : index
      %29 = vector.load %arg5[%c0_18, %c0_19, %c0_20] : memref<1x8x128xf32, #tpu.memory_space<vmem>>, vector<1x8x128xf32>
      tpu.vector_store %arg5[%c0_18, %c0_19, %c0_20], %28 {strides = array<i32>} : memref<1x8x128xf32, #tpu.memory_space<vmem>>, vector<1x8x128xf32>,
    } else {
    }
    %c32_i32_6 = arith.constant 32 : i32
    %13 = arith.cmpi slt, %9, %c32_i32_6 : i32
    %14 = arith.extui %13 : i1 to i32
    %c0_i32_7 = arith.constant 0 : i32
    %15 = arith.cmpi ne, %14, %c0_i32_7 : i32
    scf.if %15 {
      %16 = tpu.iota {dimensions = array<i32: 0>} : vector<32x128xi32>
      %17 = vector.broadcast %9 : i32 to vector<32x128xi32>
      %18 = arith.cmpi slt, %16, %17 : vector<32x128xi32>
      %cst = arith.constant 0.000000e+00 : f32
      %19 = vector.broadcast %cst : f32 to vector<32x128xf32>
      %20 = arith.select %18, %5, %19 : vector<32x128xi1>, vector<32x128xf32>
      %c0_8 = arith.constant 0 : index
      %c0_9 = arith.constant 0 : index
      %c0_10 = arith.constant 0 : index
      %21 = vector.load %arg4[%c0_8, %c0_9, %c0_10] : memref<1x8x128xf32, #tpu.memory_space<vmem>>, vector<1x8x128xf32>
      %22 = math.absf %20 : vector<32x128xf32>
      %23 = vector.shape_cast %22 : vector<32x128xf32> to vector<4x8x128xf32>
      %cst_11 = arith.constant dense<0.000000e+00> : vector<8x128xf32>
      %24 = vector.multi_reduction <add>, %23, %cst_11 [0] : vector<4x8x128xf32> to vector<8x128xf32>
      %25 = vector.shape_cast %24 : vector<8x128xf32> to vector<1x8x128xf32>
      %26 = arith.addf %21, %25 : vector<1x8x128xf32>
      %c0_12 = arith.constant 0 : index
      %c0_13 = arith.constant 0 : index
      %c0_14 = arith.constant 0 : index
      %27 = vector.load %arg4[%c0_12, %c0_13, %c0_14] : memref<1x8x128xf32, #tpu.memory_space<vmem>>, vector<1x8x128xf32>
      tpu.vector_store %arg4[%c0_12, %c0_13, %c0_14], %26 {strides = array<i32>} : memref<1x8x128xf32, #tpu.memory_space<vmem>>, vector<1x8x128xf32>,
      %c0_15 = arith.constant 0 : index
      %c0_16 = arith.constant 0 : index
      %c0_17 = arith.constant 0 : index
      %28 = vector.load %arg5[%c0_15, %c0_16, %c0_17] : memref<1x8x128xf32, #tpu.memory_space<vmem>>, vector<1x8x128xf32>
      %29 = arith.mulf %20, %20 : vector<32x128xf32>
      %30 = vector.shape_cast %29 : vector<32x128xf32> to vector<4x8x128xf32>
      %cst_18 = arith.constant dense<0.000000e+00> : vector<8x128xf32>
      %31 = vector.multi_reduction <add>, %30, %cst_18 [0] : vector<4x8x128xf32> to vector<8x128xf32>
      %32 = vector.shape_cast %31 : vector<8x128xf32> to vector<1x8x128xf32>
      %33 = arith.addf %28, %32 : vector<1x8x128xf32>
      %c0_19 = arith.constant 0 : index
      %c0_20 = arith.constant 0 : index
      %c0_21 = arith.constant 0 : index
      %34 = vector.load %arg5[%c0_19, %c0_20, %c0_21] : memref<1x8x128xf32, #tpu.memory_space<vmem>>, vector<1x8x128xf32>
      tpu.vector_store %arg5[%c0_19, %c0_20, %c0_21], %33 {strides = array<i32>} : memref<1x8x128xf32, #tpu.memory_space<vmem>>, vector<1x8x128xf32>,
    } else {
    }
    return
  }
  func.func @transform_0(%arg0: i32, %arg1: i32) -> (i32, i32) {
    %c1_i32 = arith.constant 1 : i32
    %0 = arith.muli %arg0, %c1_i32 : i32
    %1 = arith.addi %0, %arg1 : i32
    %c0_i32 = arith.constant 0 : i32
    %2 = arith.minsi %1, %c0_i32 : i32
    %c0_i32_0 = arith.constant 0 : i32
    %c0_i32_1 = arith.constant 0 : i32
    return %2, %c0_i32_0 : i32, i32
  }
  func.func @transform_1(%arg0: i32, %arg1: i32) -> (i32, i32) {
    %c1_i32 = arith.constant 1 : i32
    %0 = arith.muli %arg0, %c1_i32 : i32
    %1 = arith.addi %0, %arg1 : i32
    %c0_i32 = arith.constant 0 : i32
    %2 = arith.minsi %1, %c0_i32 : i32
    %c0_i32_0 = arith.constant 0 : i32
    %c0_i32_1 = arith.constant 0 : i32
    return %2, %c0_i32_0 : i32, i32
  }
  func.func @transform_2(%arg0: i32, %arg1: i32) -> (i32, i32, i32) {
    %c0_i32 = arith.constant 0 : i32
    %c0_i32_0 = arith.constant 0 : i32
    %c0_i32_1 = arith.constant 0 : i32
    return %arg0, %c0_i32, %c0_i32_0 : i32, i32, i32
  }
  func.func @transform_3(%arg0: i32, %arg1: i32) -> (i32, i32, i32) {
    %c0_i32 = arith.constant 0 : i32
    %c0_i32_0 = arith.constant 0 : i32
    %c0_i32_1 = arith.constant 0 : i32
    return %arg0, %c0_i32, %c0_i32_0 : i32, i32, i32
  }
}

module attributes {stable_mosaic.version = 11 : i64} {
  func.func @kernel(%arg0: i32, %arg1: i32, %arg2: memref<2xf32, #tpu.memory_space<smem>>, %arg3: memref<32x128xf32, #tpu.memory_space<vmem>>, %arg4: memref<32x128xf32, #tpu.memory_space<vmem>>, %arg5: memref<1x8x128xf32, #tpu.memory_space<vmem>>, %arg6: memref<1x8x128xf32, #tpu.memory_space<vmem>>) attributes {dimension_semantics = [#tpu.dimension_semantics<parallel>, #tpu.dimension_semantics<arbitrary>], iteration_bounds = array<i64: 1, 1>, scalar_prefetch = 1 : i64, scratch_operands = 0 : i64, tpu.core_type = #tpu.core_type<tc>, window_params = [{transform_indices = @transform_0, window_bounds = array<i64: 32, 128>}, {transform_indices = @transform_1, window_bounds = array<i64: 32, 128>}, {transform_indices = @transform_2, window_bounds = array<i64: 1, 8, 128>}, {transform_indices = @transform_3, window_bounds = array<i64: 1, 8, 128>}]} {
    %c0_i32 = arith.constant 0 : i32
    %0 = arith.cmpi eq, %arg1, %c0_i32 : i32
    %1 = arith.extui %0 : i1 to i32
    %c0_i32_0 = arith.constant 0 : i32
    %2 = arith.cmpi ne, %1, %c0_i32_0 : i32
    scf.if %2 {
      %cst = arith.constant 0.000000e+00 : f32
      %17 = vector.broadcast %cst : f32 to vector<1x8x128xf32>
      %c0_8 = arith.constant 0 : index
      %c0_9 = arith.constant 0 : index
      %c0_10 = arith.constant 0 : index
      %18 = vector.load %arg5[%c0_8, %c0_9, %c0_10] : memref<1x8x128xf32, #tpu.memory_space<vmem>>, vector<1x8x128xf32>
      tpu.vector_store %arg5[%c0_8, %c0_9, %c0_10], %17 {strides = array<i32>} : memref<1x8x128xf32, #tpu.memory_space<vmem>>, vector<1x8x128xf32>,
      %cst_11 = arith.constant 0.000000e+00 : f32
      %19 = vector.broadcast %cst_11 : f32 to vector<1x8x128xf32>
      %c0_12 = arith.constant 0 : index
      %c0_13 = arith.constant 0 : index
      %c0_14 = arith.constant 0 : index
      %20 = vector.load %arg6[%c0_12, %c0_13, %c0_14] : memref<1x8x128xf32, #tpu.memory_space<vmem>>, vector<1x8x128xf32>
      tpu.vector_store %arg6[%c0_12, %c0_13, %c0_14], %19 {strides = array<i32>} : memref<1x8x128xf32, #tpu.memory_space<vmem>>, vector<1x8x128xf32>,
    } else {
    }
    %c0 = arith.constant 0 : index
    %c0_1 = arith.constant 0 : index
    %3 = vector.load %arg3[%c0, %c0_1] : memref<32x128xf32, #tpu.memory_space<vmem>>, vector<32x128xf32>
    %c0_2 = arith.constant 0 : index
    %c0_3 = arith.constant 0 : index
    %4 = vector.load %arg4[%c0_2, %c0_3] : memref<32x128xf32, #tpu.memory_space<vmem>>, vector<32x128xf32>
    %5 = arith.subf %3, %4 : vector<32x128xf32>
    %6 = math.absf %5 : vector<32x128xf32>
    %c1_i32 = arith.constant 1 : i32
    %7 = arith.muli %arg0, %c1_i32 : i32
    %8 = arith.addi %7, %arg1 : i32
    %c32_i32 = arith.constant 32 : i32
    %9 = arith.muli %8, %c32_i32 : i32
    %c16_i32 = arith.constant 16 : i32
    %10 = arith.subi %c16_i32, %9 : i32
    %c32_i32_4 = arith.constant 32 : i32
    %11 = arith.cmpi sge, %10, %c32_i32_4 : i32
    %12 = arith.extui %11 : i1 to i32
    %c0_i32_5 = arith.constant 0 : i32
    %13 = arith.cmpi ne, %12, %c0_i32_5 : i32
    scf.if %13 {
      %c0_8 = arith.constant 0 : index
      %17 = memref.load %arg2[%c0_8] : memref<2xf32, #tpu.memory_space<smem>>
      %18 = vector.broadcast %17 : f32 to vector<32x128xf32>
      %19 = arith.cmpf oge, %6, %18 : vector<32x128xf32>
      %c0_9 = arith.constant 0 : index
      %c0_10 = arith.constant 0 : index
      %c0_11 = arith.constant 0 : index
      %20 = vector.load %arg5[%c0_9, %c0_10, %c0_11] : memref<1x8x128xf32, #tpu.memory_space<vmem>>, vector<1x8x128xf32>
      %cst = arith.constant 0.000000e+00 : f32
      %21 = vector.broadcast %cst : f32 to vector<32x128xf32>
      %22 = arith.select %19, %6, %21 : vector<32x128xi1>, vector<32x128xf32>
      %23 = vector.shape_cast %22 : vector<32x128xf32> to vector<4x8x128xf32>
      %cst_12 = arith.constant dense<0.000000e+00> : vector<8x128xf32>
      %24 = vector.multi_reduction <add>, %23, %cst_12 [0] : vector<4x8x128xf32> to vector<8x128xf32>
      %25 = vector.shape_cast %24 : vector<8x128xf32> to vector<1x8x128xf32>
      %26 = arith.addf %20, %25 : vector<1x8x128xf32>
      %c0_13 = arith.constant 0 : index
      %c0_14 = arith.constant 0 : index
      %c0_15 = arith.constant 0 : index
      %27 = vector.load %arg5[%c0_13, %c0_14, %c0_15] : memref<1x8x128xf32, #tpu.memory_space<vmem>>, vector<1x8x128xf32>
      tpu.vector_store %arg5[%c0_13, %c0_14, %c0_15], %26 {strides = array<i32>} : memref<1x8x128xf32, #tpu.memory_space<vmem>>, vector<1x8x128xf32>,
      %c0_16 = arith.constant 0 : index
      %c0_17 = arith.constant 0 : index
      %c0_18 = arith.constant 0 : index
      %28 = vector.load %arg6[%c0_16, %c0_17, %c0_18] : memref<1x8x128xf32, #tpu.memory_space<vmem>>, vector<1x8x128xf32>
      %29 = arith.extui %19 : vector<32x128xi1> to vector<32x128xi32>
      %30 = arith.sitofp %29 : vector<32x128xi32> to vector<32x128xf32>
      %31 = vector.shape_cast %30 : vector<32x128xf32> to vector<4x8x128xf32>
      %cst_19 = arith.constant dense<0.000000e+00> : vector<8x128xf32>
      %32 = vector.multi_reduction <add>, %31, %cst_19 [0] : vector<4x8x128xf32> to vector<8x128xf32>
      %33 = vector.shape_cast %32 : vector<8x128xf32> to vector<1x8x128xf32>
      %34 = arith.addf %28, %33 : vector<1x8x128xf32>
      %c0_20 = arith.constant 0 : index
      %c0_21 = arith.constant 0 : index
      %c0_22 = arith.constant 0 : index
      %35 = vector.load %arg6[%c0_20, %c0_21, %c0_22] : memref<1x8x128xf32, #tpu.memory_space<vmem>>, vector<1x8x128xf32>
      tpu.vector_store %arg6[%c0_20, %c0_21, %c0_22], %34 {strides = array<i32>} : memref<1x8x128xf32, #tpu.memory_space<vmem>>, vector<1x8x128xf32>,
    } else {
    }
    %c32_i32_6 = arith.constant 32 : i32
    %14 = arith.cmpi slt, %10, %c32_i32_6 : i32
    %15 = arith.extui %14 : i1 to i32
    %c0_i32_7 = arith.constant 0 : i32
    %16 = arith.cmpi ne, %15, %c0_i32_7 : i32
    scf.if %16 {
      %17 = tpu.iota {dimensions = array<i32: 0>} : vector<32x128xi32>
      %18 = vector.broadcast %10 : i32 to vector<32x128xi32>
      %19 = arith.cmpi slt, %17, %18 : vector<32x128xi32>
      %c0_8 = arith.constant 0 : index
      %20 = memref.load %arg2[%c0_8] : memref<2xf32, #tpu.memory_space<smem>>
      %21 = vector.broadcast %20 : f32 to vector<32x128xf32>
      %22 = arith.cmpf oge, %6, %21 : vector<32x128xf32>
      %23 = arith.andi %22, %19 : vector<32x128xi1>
      %c0_9 = arith.constant 0 : index
      %c0_10 = arith.constant 0 : index
      %c0_11 = arith.constant 0 : index
      %24 = vector.load %arg5[%c0_9, %c0_10, %c0_11] : memref<1x8x128xf32, #tpu.memory_space<vmem>>, vector<1x8x128xf32>
      %cst = arith.constant 0.000000e+00 : f32
      %25 = vector.broadcast %cst : f32 to vector<32x128xf32>
      %26 = arith.select %23, %6, %25 : vector<32x128xi1>, vector<32x128xf32>
      %27 = vector.shape_cast %26 : vector<32x128xf32> to vector<4x8x128xf32>
      %cst_12 = arith.constant dense<0.000000e+00> : vector<8x128xf32>
      %28 = vector.multi_reduction <add>, %27, %cst_12 [0] : vector<4x8x128xf32> to vector<8x128xf32>
      %29 = vector.shape_cast %28 : vector<8x128xf32> to vector<1x8x128xf32>
      %30 = arith.addf %24, %29 : vector<1x8x128xf32>
      %c0_13 = arith.constant 0 : index
      %c0_14 = arith.constant 0 : index
      %c0_15 = arith.constant 0 : index
      %31 = vector.load %arg5[%c0_13, %c0_14, %c0_15] : memref<1x8x128xf32, #tpu.memory_space<vmem>>, vector<1x8x128xf32>
      tpu.vector_store %arg5[%c0_13, %c0_14, %c0_15], %30 {strides = array<i32>} : memref<1x8x128xf32, #tpu.memory_space<vmem>>, vector<1x8x128xf32>,
      %c0_16 = arith.constant 0 : index
      %c0_17 = arith.constant 0 : index
      %c0_18 = arith.constant 0 : index
      %32 = vector.load %arg6[%c0_16, %c0_17, %c0_18] : memref<1x8x128xf32, #tpu.memory_space<vmem>>, vector<1x8x128xf32>
      %33 = arith.extui %23 : vector<32x128xi1> to vector<32x128xi32>
      %34 = arith.sitofp %33 : vector<32x128xi32> to vector<32x128xf32>
      %35 = vector.shape_cast %34 : vector<32x128xf32> to vector<4x8x128xf32>
      %cst_19 = arith.constant dense<0.000000e+00> : vector<8x128xf32>
      %36 = vector.multi_reduction <add>, %35, %cst_19 [0] : vector<4x8x128xf32> to vector<8x128xf32>
      %37 = vector.shape_cast %36 : vector<8x128xf32> to vector<1x8x128xf32>
      %38 = arith.addf %32, %37 : vector<1x8x128xf32>
      %c0_20 = arith.constant 0 : index
      %c0_21 = arith.constant 0 : index
      %c0_22 = arith.constant 0 : index
      %39 = vector.load %arg6[%c0_20, %c0_21, %c0_22] : memref<1x8x128xf32, #tpu.memory_space<vmem>>, vector<1x8x128xf32>
      tpu.vector_store %arg6[%c0_20, %c0_21, %c0_22], %38 {strides = array<i32>} : memref<1x8x128xf32, #tpu.memory_space<vmem>>, vector<1x8x128xf32>,
    } else {
    }
    return
  }
  func.func @transform_0(%arg0: i32, %arg1: i32, %arg2: memref<2xf32, #tpu.memory_space<smem>>) -> (i32, i32) {
    %c1_i32 = arith.constant 1 : i32
    %0 = arith.muli %arg0, %c1_i32 : i32
    %1 = arith.addi %0, %arg1 : i32
    %c0_i32 = arith.constant 0 : i32
    %2 = arith.minsi %1, %c0_i32 : i32
    %c0_i32_0 = arith.constant 0 : i32
    %c0_i32_1 = arith.constant 0 : i32
    return %2, %c0_i32_0 : i32, i32
  }
  func.func @transform_1(%arg0: i32, %arg1: i32, %arg2: memref<2xf32, #tpu.memory_space<smem>>) -> (i32, i32) {
    %c1_i32 = arith.constant 1 : i32
    %0 = arith.muli %arg0, %c1_i32 : i32
    %1 = arith.addi %0, %arg1 : i32
    %c0_i32 = arith.constant 0 : i32
    %2 = arith.minsi %1, %c0_i32 : i32
    %c0_i32_0 = arith.constant 0 : i32
    %c0_i32_1 = arith.constant 0 : i32
    return %2, %c0_i32_0 : i32, i32
  }
  func.func @transform_2(%arg0: i32, %arg1: i32, %arg2: memref<2xf32, #tpu.memory_space<smem>>) -> (i32, i32, i32) {
    %c0_i32 = arith.constant 0 : i32
    %c0_i32_0 = arith.constant 0 : i32
    %c0_i32_1 = arith.constant 0 : i32
    return %arg0, %c0_i32, %c0_i32_0 : i32, i32, i32
  }
  func.func @transform_3(%arg0: i32, %arg1: i32, %arg2: memref<2xf32, #tpu.memory_space<smem>>) -> (i32, i32, i32) {
    %c0_i32 = arith.constant 0 : i32
    %c0_i32_0 = arith.constant 0 : i32
    %c0_i32_1 = arith.constant 0 : i32
    return %arg0, %c0_i32, %c0_i32_0 : i32, i32, i32
  }
}

</mosaic_0001>

<bundles_post_ra>
// kernel: flexible_thresholded_loss.2
= control target key start
LH: loop header
LB: loop body
LE: loop exit
PB: predicated region body
PF: predicated region fallthrough
CT: control target
= control target key end

     0   :  { %s239_s0 = inlined_call_operand.vmem [shape: f32[16,128], index: 0, kind: input, shape index: {}]   ;;  %s240_s1 = inlined_call_operand.vmem [shape: f32[16,128], index: 1, kind: input, shape index: {}]   ;;  %s241_s2 = inlined_call_operand.vmem [shape: f32[1,8,128], index: 2, kind: output, shape index: {0}]   ;;  %s242_s3 = inlined_call_operand.vmem [shape: f32[1,8,128], index: 3, kind: output, shape index: {1}]  }
   0x1   :  { %v103_v0 = vld [vmem:[%s239_s0] sm:$0xff]  ;;  %v104_v1 = vld [vmem:[%s239_s0 + $0x8] sm:$0xff] }
   0x2   :  { %v107_v2 = vld [vmem:[%s240_s1] sm:$0xff]  ;;  %v108_v3 = vld [vmem:[%s240_s1 + $0x8] sm:$0xff] }
   0x3   :  { %v111_v4 = vsub.f32 %v103_v0, %v107_v2  ;;  %v112_v5 = vsub.f32 %v104_v1, %v108_v3 }
   0x5   :  { %v161_v6 = vand.u32 2147483647, %v111_v4  ;;  %v171_v7 = vmul.f32 %v111_v4, %v111_v4  ;;  %v162_v8 = vand.u32 2147483647, %v112_v5  ;;  %v172_v9 = vmul.f32 %v112_v5, %v112_v5 }
   0x7   :  { %v165_v10 = vadd.f32 %v162_v8, %v161_v6  ;;  %v175_v11 = vadd.f32 %v172_v9, %v171_v7 }
   0x9   :  { %169 = vst [vmem:[%s241_s2] sm:$0xff] %v165_v10 }
   0xa   :  { %179 = vst [vmem:[%s242_s3] sm:$0xff] %v175_v11 }

// kernel: flexible_thresholded_loss.3
= control target key start
LH: loop header
LB: loop body
LE: loop exit
PB: predicated region body
PF: predicated region fallthrough
CT: control target
= control target key end

     0   :  { %s255_s18 = smov [#allocation3]   ;;  %s303_s0 = inlined_call_operand.vmem [shape: f32[2], index: 0, kind: input, shape index: {}]   ;;  %s304_s1 = inlined_call_operand.vmem [shape: f32[16,128], index: 1, kind: input, shape index: {}]   ;;  %s305_s2 = inlined_call_operand.vmem [shape: f32[16,128], index: 2, kind: input, shape index: {}]   ;;  %s306_s3 = inlined_call_operand.vmem [shape: f32[1,8,128], index: 3, kind: output, shape index: {0}]   ;;  %s307_s4 = inlined_call_operand.vmem [shape: f32[1,8,128], index: 4, kind: output, shape index: {1}]  }
   0x1   :  { %s11_s17 = sshll.u32 %s303_s0, 4  ;;  %s12_s17 = int_to_ptr.vmem [resolvable:$true] %s11_s17 }
   0x2   :  { %14 = dma.vmem_to_smem %s12_s17, 16, %s255_s18, [#allocation2] }
   0x3   :  { %253 = dma.done.wait [#allocation2], 16 }
   0x4   :  { %254 = vsyncadd [#allocation2], 4294967280 }
   0x5   :  { %17 = sfence }
   0x6   :  { %v112_v0 = vld [vmem:[%s304_s1] sm:$0xff]  ;;  %v113_v1 = vld [vmem:[%s304_s1 + $0x8] sm:$0xff]  ;;  %s179_s25 = sld [smem:[#allocation3]]  ;;  %v256_v11 = vmov 0.0  }
   0x7   :  { %v116_v2 = vld [vmem:[%s305_s2] sm:$0xff]  ;;  %v117_v3 = vld [vmem:[%s305_s2 + $0x8] sm:$0xff] }
   0x8   :  { %v120_v4 = vsub.f32 %v112_v0, %v116_v2  ;;  %v121_v5 = vsub.f32 %v113_v1, %v117_v3 }
   0xa   :  { %v124_v6 = vand.u32 2147483647, %v120_v4  ;;  %v125_v7 = vand.u32 2147483647, %v121_v5 }
   0xc   :  { %v180_v8 = vstv %s179_s25 }
   0xd   :  { %vm181_vm0 = vcmp.ge.f32.partialorder %v124_v6, %v180_v8  ;;  %vm182_vm1 = vcmp.ge.f32.partialorder %v125_v7, %v180_v8 }
   0xe   :  { %v190_v9 = vsel %vm181_vm0, %v124_v6, 0.0  ;;  %v191_v10 = vsel %vm182_vm1, %v125_v7, 0.0  ;;  %v237_v12 = vsel %vm181_vm0, 1.0, %v256_v11  ;;  %v238_v13 = vsel %vm182_vm1, 1.0, %v256_v11 }
   0xf   :  { %v194_v14 = vadd.f32 %v191_v10, %v190_v9  ;;  %v208_v15 = vadd.f32 %v238_v13, %v237_v12 }
  0x11   :  { %198 = vst [vmem:[%s306_s3] sm:$0xff] %v194_v14 }
  0x12   :  { %212 = vst [vmem:[%s307_s4] sm:$0xff] %v208_v15 }

</bundles_post_ra>
